<compile_context>
chip_gen: v6e
topology: v6e:2x2x1
jax: 0.10.0
libtpu: 0.0.40
codegen_flags: <defaults>
</compile_context>

<pallas_src>
import functools

import jax
import jax.numpy as jnp
import numpy as np
from jax.experimental import pallas as pl
from jax.experimental.pallas import tpu as pltpu


def resblock_kernel(x_ref, w1_ref, b1_ref, w2_ref, b2_ref, o_ref, *, img_h):
    # x_ref : (M, WC)      M = B*img_h stacked image rows, lanes = flattened (w, c)
    # w{1,2}: (3*WC, WC)   bf16 block-Toeplitz row weights (kh-major)
    # b{1,2}: (1, WC)      f32 per-lane bias (channel bias tiled over w)
    # o_ref : (M, WC)
    M, WC = x_ref.shape
    f32 = jnp.float32

    x = x_ref[...].astype(f32)

    # Row index within each image; zeroes the rolled-in rows at the top/bottom
    # image edges (the height part of padding=1) and across the joints between
    # the B images stacked in this block.  Computed once, reused by both convs.
    h_idx = jax.lax.broadcasted_iota(jnp.int32, (M, WC), 0) % img_h

    def build_lhs(rows):
        # rows: (M, WC) f32 -> (M, 3*WC) bf16 = [row h-1 | row h | row h+1].
        # pltpu.roll uses the XLU slot and the masks the VPU, so the operand
        # build avoids sublane-misaligned VMEM copies on the ld/st slots.
        up = pltpu.roll(rows, shift=1, axis=0)        # up[r] = rows[r-1]
        dn = pltpu.roll(rows, shift=M - 1, axis=0)    # dn[r] = rows[r+1]
        up = jnp.where(h_idx > 0, up, 0.0)
        dn = jnp.where(h_idx < img_h - 1, dn, 0.0)
        return jnp.concatenate([up, rows, dn], axis=1).astype(jnp.bfloat16)

    # conv1: a single (M, 3*WC) x (3*WC, WC) MXU matmul, f32 accumulate.
    y1 = jnp.dot(build_lhs(x), w1_ref[...],
                 preferred_element_type=f32) + b1_ref[...]

    # conv2 on the register-resident y1 (no VMEM scratch round trip).
    y2 = jnp.dot(build_lhs(y1), w2_ref[...],
                 preferred_element_type=f32) + b2_ref[...]

    # Residual add fused with the lane-dense, unmasked output store.
    o_ref[...] = (x + y2).astype(o_ref.dtype)


def _fused_row_weight(w_oihw, width):
    """(C_out, C_in, 3, 3) -> (3*W*C_in, W*C_out) block-Toeplitz row weight.

    Acts on a lane-concatenated [row h-1 | row h | row h+1] operand whose lanes
    are flattened (w, c).  The width taps (kw) and the width zero-padding are
    encoded by shifted-identity selection matrices; out-of-range taps have no
    row, which reproduces padding=1 exactly.
    """
    c_out, c_in = w_oihw.shape[0], w_oihw.shape[1]
    wk = jnp.transpose(w_oihw, (2, 3, 1, 0)).astype(jnp.float32)  # (kh,kw,ci,co)
    blocks = []
    for kh in range(3):
        t = jnp.zeros((width * c_in, width * c_out), jnp.float32)
        for kw in range(3):
            # sel[wi, wo] = 1  iff  wi == wo + kw - 1
            sel = jnp.eye(width, width, k=-(kw - 1), dtype=jnp.float32)
            t = t + jnp.kron(sel, wk[kh, kw])
        blocks.append(t)
    return jnp.concatenate(blocks, axis=0)                 # (3*W*Cin, W*Cout)


def prep_resblock_params(w1, b1, w2, b2, width):
    """Precompute kernel-side weights once (reuse across calls / layers)."""
    w1r = _fused_row_weight(w1, width).astype(jnp.bfloat16)
    w2r = _fused_row_weight(w2, width).astype(jnp.bfloat16)
    b1r = jnp.tile(b1.astype(jnp.float32), width).reshape(1, -1)
    b2r = jnp.tile(b2.astype(jnp.float32), width).reshape(1, -1)
    return w1r, b1r, w2r, b2r


def _pick_imgs_per_block(n_images, img_h):
    # Fill the MXU: target M = B*H ~ 256 rows (v6e/v7x MXU height; 2x v5e's
    # 128), but keep >= 2 grid steps when possible so v7x's two TensorCores
    # both get work under dimension_semantics=("parallel",).
    b = max(1, min(n_images, 256 // max(img_h, 1)))
    while b > 1 and pl.cdiv(n_images, b) < 2:
        b = max(1, b // 2)
    return b


def resblock_pallas_rows(x_rows, w1r, b1r, w2r, b2r, *, img_h,
                         imgs_per_block=None):
    """Lane-dense entry point: x_rows is (N*H, W*C) stacked image rows.

    For stacked ResBlocks keep activations in this layout and chain this
    function directly so the NCHW<->row transposes are hoisted out.
    """
    total_rows, wc = x_rows.shape
    if wc % 128 != 0:
        raise ValueError(
            f"W*C must be a multiple of 128 for the lane-dense layout, got {wc}")
    n_images = total_rows // img_h
    if imgs_per_block is None:
        imgs_per_block = _pick_imgs_per_block(n_images, img_h)
    m = imgs_per_block * img_h
    if m % 8 != 0:
        raise ValueError(f"block rows (B*H = {m}) must be a multiple of 8")

    n_blocks = pl.cdiv(total_rows, m)
    padded_rows = n_blocks * m
    if padded_rows != total_rows:
        x_rows = jnp.pad(x_rows, ((0, padded_rows - total_rows), (0, 0)))

    out_rows = pl.pallas_call(
        functools.partial(resblock_kernel, img_h=img_h),
        out_shape=jax.ShapeDtypeStruct((padded_rows, wc), x_rows.dtype),
        grid=(n_blocks,),
        in_specs=[
            pl.BlockSpec((m, wc), lambda n: (n, 0)),
            # Constant (0,0) index maps: the weight/bias blocks are fetched
            # once and stay VMEM-resident across all grid steps.
            pl.BlockSpec((3 * wc, wc), lambda n: (0, 0)),
            pl.BlockSpec((1, wc), lambda n: (0, 0)),
            pl.BlockSpec((3 * wc, wc), lambda n: (0, 0)),
            pl.BlockSpec((1, wc), lambda n: (0, 0)),
        ],
        out_specs=pl.BlockSpec((m, wc), lambda n: (n, 0)),
        compiler_params=pltpu.CompilerParams(
            dimension_semantics=("parallel",)),
    )(x_rows, w1r, b1r, w2r, b2r)

    return out_rows[:total_rows]


def resblock_pallas(x_nchw, w1, b1, w2, b2):
    """x_nchw: (N, C, H, W); w: (C_out, C_in, 3, 3) PyTorch layout; b: (C,)."""
    n, c, h, w = x_nchw.shape
    wc = w * c
    # NCHW -> NHWC -> lane-dense stacked rows (N*H, W*C).
    x_rows = jnp.transpose(x_nchw, (0, 2, 3, 1)).reshape(n * h, wc)
    w1r, b1r, w2r, b2r = prep_resblock_params(w1, b1, w2, b2, w)
    out_rows = resblock_pallas_rows(x_rows, w1r, b1r, w2r, b2r, img_h=h)
    return jnp.transpose(out_rows.reshape(n, h, w, c), (0, 3, 1, 2))


# ----------------------------- reference ------------------------------------
def _conv_ref(x_nhwc, w_oihw, b):
    w_hwio = jnp.transpose(w_oihw, (2, 3, 1, 0))
    y = jax.lax.conv_general_dilated(
        x_nhwc, w_hwio, window_strides=(1, 1), padding="SAME",
        dimension_numbers=("NHWC", "HWIO", "NHWC"))
    return y + b


def resblock_ref(x_nchw, w1, b1, w2, b2):
    x_nhwc = jnp.transpose(x_nchw, (0, 2, 3, 1))
    y = _conv_ref(_conv_ref(x_nhwc, w1, b1), w2, b2)
    return jnp.transpose(x_nhwc + y, (0, 3, 1, 2))


if __name__ == "__main__":
    # nf = 8, W*C = 128 lanes; N=16 -> imgs_per_block=8 -> M=128, grid=(2,).
    N, C, H, W = 16, 8, 16, 16
    key = jax.random.PRNGKey(0)
    kx, k1w, k1b, k2w, k2b = jax.random.split(key, 5)

    x = jax.random.normal(kx, (N, C, H, W), dtype=jnp.float32)

    # Deterministic Conv2d-style init (uniform in +-1/sqrt(fan_in)), fan_in = C*3*3.
    bound = 1.0 / np.sqrt(C * 3 * 3)
    w1 = jax.random.uniform(k1w, (C, C, 3, 3), minval=-bound, maxval=bound)
    b1 = jax.random.uniform(k1b, (C,), minval=-bound, maxval=bound)
    w2 = jax.random.uniform(k2w, (C, C, 3, 3), minval=-bound, maxval=bound)
    b2 = jax.random.uniform(k2b, (C,), minval=-bound, maxval=bound)

    out = jax.block_until_ready(resblock_pallas(x, w1, b1, w2, b2))
    ref = jax.block_until_ready(resblock_ref(x, w1, b1, w2, b2))

    # bf16 MXU operands (f32 accumulate) -> loosened tolerance vs the f32 ref.
    np.testing.assert_allclose(np.asarray(out), np.asarray(ref),
                               rtol=2e-2, atol=2e-2)
    print("KERNEL_OK")
</pallas_src>

<mosaic_0001>
module attributes {stable_mosaic.version = 11 : i64} {
  func.func @resblock_kernel(%arg0: i32, %arg1: memref<128x128xf32, #tpu.memory_space<vmem>>, %arg2: memref<384x128xbf16, #tpu.memory_space<vmem>>, %arg3: memref<1x128xf32, #tpu.memory_space<vmem>>, %arg4: memref<384x128xbf16, #tpu.memory_space<vmem>>, %arg5: memref<1x128xf32, #tpu.memory_space<vmem>>, %arg6: memref<128x128xf32, #tpu.memory_space<vmem>>) attributes {dimension_semantics = [#tpu.dimension_semantics<parallel>], iteration_bounds = array<i64: 2>, scalar_prefetch = 0 : i64, scratch_operands = 0 : i64, tpu.core_type = #tpu.core_type<tc>, window_params = [{transform_indices = @transform_0, window_bounds = array<i64: 128, 128>}, {pipeline_mode = #tpu.pipeline_mode<synchronous>, transform_indices = @transform_1, window_bounds = array<i64: 384, 128>}, {pipeline_mode = #tpu.pipeline_mode<synchronous>, transform_indices = @transform_2, window_bounds = array<i64: 1, 128>}, {pipeline_mode = #tpu.pipeline_mode<synchronous>, transform_indices = @transform_3, window_bounds = array<i64: 384, 128>}, {pipeline_mode = #tpu.pipeline_mode<synchronous>, transform_indices = @transform_4, window_bounds = array<i64: 1, 128>}, {transform_indices = @transform_5, window_bounds = array<i64: 128, 128>}]} {
    %c0 = arith.constant 0 : index
    %c0_0 = arith.constant 0 : index
    %0 = vector.load %arg1[%c0, %c0_0] : memref<128x128xf32, #tpu.memory_space<vmem>>, vector<128x128xf32>
    %1 = tpu.iota {dimensions = array<i32: 0>} : vector<128x128xi32>
    %c16_i32 = arith.constant 16 : i32
    %c0_i32 = arith.constant 0 : i32
    %2 = arith.cmpi eq, %c16_i32, %c0_i32 : i32
    %c1_i32 = arith.constant 1 : i32
    %3 = arith.select %2, %c1_i32, %c16_i32 : i32
    %4 = vector.broadcast %3 : i32 to vector<128x128xi32>
    %5 = arith.remsi %1, %4 : vector<128x128xi32>
    %c0_i32_1 = arith.constant 0 : i32
    %6 = vector.broadcast %c0_i32_1 : i32 to vector<128x128xi32>
    %7 = arith.cmpi ne, %5, %6 : vector<128x128xi32>
    %c0_i32_2 = arith.constant 0 : i32
    %8 = vector.broadcast %c0_i32_2 : i32 to vector<128x128xi32>
    %9 = arith.cmpi slt, %5, %8 : vector<128x128xi32>
    %c0_i32_3 = arith.constant 0 : i32
    %10 = arith.cmpi slt, %3, %c0_i32_3 : i32
    %11 = vector.broadcast %10 : i1 to vector<128x128xi1>
    %12 = vector.broadcast %11 : vector<128x128xi1> to vector<128x128xi1>
    %13 = arith.xori %9, %12 : vector<128x128xi1>
    %14 = arith.andi %13, %7 : vector<128x128xi1>
    %15 = vector.broadcast %3 : i32 to vector<128x128xi32>
    %16 = arith.addi %5, %15 : vector<128x128xi32>
    %17 = arith.select %14, %16, %5 : vector<128x128xi1>, vector<128x128xi32>
    %c1_i32_4 = arith.constant 1 : i32
    %18 = tpu.dynamic_rotate %0 by %c1_i32_4 dim 0 : vector<128x128xf32>, i32 -> vector<128x128xf32>
    %c127_i32 = arith.constant 127 : i32
    %19 = tpu.dynamic_rotate %0 by %c127_i32 dim 0 : vector<128x128xf32>, i32 -> vector<128x128xf32>
    %c0_i32_5 = arith.constant 0 : i32
    %20 = vector.broadcast %c0_i32_5 : i32 to vector<128x128xi32>
    %21 = arith.cmpi sgt, %17, %20 : vector<128x128xi32>
    %cst = arith.constant 0.000000e+00 : f32
    %22 = vector.broadcast %cst : f32 to vector<128x128xf32>
    %23 = arith.select %21, %18, %22 : vector<128x128xi1>, vector<128x128xf32>
    %c15_i32 = arith.constant 15 : i32
    %24 = vector.broadcast %c15_i32 : i32 to vector<128x128xi32>
    %25 = arith.cmpi slt, %17, %24 : vector<128x128xi32>
    %cst_6 = arith.constant 0.000000e+00 : f32
    %26 = vector.broadcast %cst_6 : f32 to vector<128x128xf32>
    %27 = arith.select %25, %19, %26 : vector<128x128xi1>, vector<128x128xf32>
    %28 = tpu.concatenate %23, %0, %27 in 1 : vector<128x128xf32>, vector<128x128xf32>, vector<128x128xf32> -> vector<128x384xf32>
    %29 = arith.truncf %28 : vector<128x384xf32> to vector<128x384xbf16>
    %c0_7 = arith.constant 0 : index
    %c0_8 = arith.constant 0 : index
    %30 = vector.load %arg2[%c0_7, %c0_8] : memref<384x128xbf16, #tpu.memory_space<vmem>>, vector<384x128xbf16>
    %cst_9 = arith.constant dense<0.000000e+00> : vector<128x128xf32>
    %31 = tpu.matmul %29, %30, %cst_9 {dimension_numbers = #tpu.dot_dimension_numbers<[1], [0], [0], [1], [0, 0, 1, 1], [], []>} : vector<128x384xbf16>, vector<384x128xbf16>, vector<128x128xf32> -> vector<128x128xf32>
    %c0_10 = arith.constant 0 : index
    %c0_11 = arith.constant 0 : index
    %32 = vector.load %arg3[%c0_10, %c0_11] : memref<1x128xf32, #tpu.memory_space<vmem>>, vector<1x128xf32>
    %33 = vector.broadcast %32 : vector<1x128xf32> to vector<128x128xf32>
    %34 = arith.addf %31, %33 : vector<128x128xf32>
    %c1_i32_12 = arith.constant 1 : i32
    %35 = tpu.dynamic_rotate %34 by %c1_i32_12 dim 0 : vector<128x128xf32>, i32 -> vector<128x128xf32>
    %c127_i32_13 = arith.constant 127 : i32
    %36 = tpu.dynamic_rotate %34 by %c127_i32_13 dim 0 : vector<128x128xf32>, i32 -> vector<128x128xf32>
    %c0_i32_14 = arith.constant 0 : i32
    %37 = vector.broadcast %c0_i32_14 : i32 to vector<128x128xi32>
    %38 = arith.cmpi sgt, %17, %37 : vector<128x128xi32>
    %cst_15 = arith.constant 0.000000e+00 : f32
    %39 = vector.broadcast %cst_15 : f32 to vector<128x128xf32>
    %40 = arith.select %38, %35, %39 : vector<128x128xi1>, vector<128x128xf32>
    %c15_i32_16 = arith.constant 15 : i32
    %41 = vector.broadcast %c15_i32_16 : i32 to vector<128x128xi32>
    %42 = arith.cmpi slt, %17, %41 : vector<128x128xi32>
    %cst_17 = arith.constant 0.000000e+00 : f32
    %43 = vector.broadcast %cst_17 : f32 to vector<128x128xf32>
    %44 = arith.select %42, %36, %43 : vector<128x128xi1>, vector<128x128xf32>
    %45 = tpu.concatenate %40, %34, %44 in 1 : vector<128x128xf32>, vector<128x128xf32>, vector<128x128xf32> -> vector<128x384xf32>
    %46 = arith.truncf %45 : vector<128x384xf32> to vector<128x384xbf16>
    %c0_18 = arith.constant 0 : index
    %c0_19 = arith.constant 0 : index
    %47 = vector.load %arg4[%c0_18, %c0_19] : memref<384x128xbf16, #tpu.memory_space<vmem>>, vector<384x128xbf16>
    %cst_20 = arith.constant dense<0.000000e+00> : vector<128x128xf32>
    %48 = tpu.matmul %46, %47, %cst_20 {dimension_numbers = #tpu.dot_dimension_numbers<[1], [0], [0], [1], [0, 0, 1, 1], [], []>} : vector<128x384xbf16>, vector<384x128xbf16>, vector<128x128xf32> -> vector<128x128xf32>
    %c0_21 = arith.constant 0 : index
    %c0_22 = arith.constant 0 : index
    %49 = vector.load %arg5[%c0_21, %c0_22] : memref<1x128xf32, #tpu.memory_space<vmem>>, vector<1x128xf32>
    %50 = vector.broadcast %49 : vector<1x128xf32> to vector<128x128xf32>
    %51 = arith.addf %48, %50 : vector<128x128xf32>
    %52 = arith.addf %0, %51 : vector<128x128xf32>
    %c0_23 = arith.constant 0 : index
    %c0_24 = arith.constant 0 : index
    %53 = vector.load %arg6[%c0_23, %c0_24] : memref<128x128xf32, #tpu.memory_space<vmem>>, vector<128x128xf32>
    tpu.vector_store %arg6[%c0_23, %c0_24], %52 {strides = array<i32>} : memref<128x128xf32, #tpu.memory_space<vmem>>, vector<128x128xf32>,
    return
  }
  func.func @transform_0(%arg0: i32) -> (i32, i32) {
    %c0_i32 = arith.constant 0 : i32
    %c0_i32_0 = arith.constant 0 : i32
    return %arg0, %c0_i32 : i32, i32
  }
  func.func @transform_1(%arg0: i32) -> (i32, i32) {
    %c0_i32 = arith.constant 0 : i32
    %c0_i32_0 = arith.constant 0 : i32
    %c0_i32_1 = arith.constant 0 : i32
    return %c0_i32, %c0_i32_0 : i32, i32
  }
  func.func @transform_2(%arg0: i32) -> (i32, i32) {
    %c0_i32 = arith.constant 0 : i32
    %c0_i32_0 = arith.constant 0 : i32
    %c0_i32_1 = arith.constant 0 : i32
    return %c0_i32, %c0_i32_0 : i32, i32
  }
  func.func @transform_3(%arg0: i32) -> (i32, i32) {
    %c0_i32 = arith.constant 0 : i32
    %c0_i32_0 = arith.constant 0 : i32
    %c0_i32_1 = arith.constant 0 : i32
    return %c0_i32, %c0_i32_0 : i32, i32
  }
  func.func @transform_4(%arg0: i32) -> (i32, i32) {
    %c0_i32 = arith.constant 0 : i32
    %c0_i32_0 = arith.constant 0 : i32
    %c0_i32_1 = arith.constant 0 : i32
    return %c0_i32, %c0_i32_0 : i32, i32
  }
  func.func @transform_5(%arg0: i32) -> (i32, i32) {
    %c0_i32 = arith.constant 0 : i32
    %c0_i32_0 = arith.constant 0 : i32
    return %arg0, %c0_i32 : i32, i32
  }
}

</mosaic_0001>

<bundles_post_ra>
// kernel: tpu_custom_call.1
= control target key start
LH: loop header
LB: loop body
LE: loop exit
PB: predicated region body
PF: predicated region fallthrough
CT: control target
= control target key end

     0   :  { %10 = vsyncpa [#allocation3], 0  ;;  %s3226_s0 = inlined_call_operand.hbm [shape: f32[256,128], index: 0, kind: input, shape index: {}]   ;;  %s3227_s1 = inlined_call_operand.hbm [shape: bf16[384,128], index: 1, kind: input, shape index: {}]   ;;  %s3228_s2 = inlined_call_operand.vmem [shape: f32[1,128], index: 2, kind: input, shape index: {}]   ;;  %s3229_s3 = inlined_call_operand.hbm [shape: bf16[384,128], index: 3, kind: input, shape index: {}]   ;;  %s3230_s4 = inlined_call_operand.vmem [shape: f32[1,128], index: 4, kind: input, shape index: {}]   ;;  %s3231_s5 = inlined_call_operand.hbm [shape: f32[256,128], index: 5, kind: output, shape index: {}]  }
   0x1   :  { %12 = vsyncpa [#allocation3 + $0x1], 0 }
   0x2   :  { %13 = vsyncpa [#allocation6], 0 }
   0x3   :  { %14 = vsyncpa [#allocation4], 0 }
   0x4   :  { %16 = vsyncpa [#allocation4 + $0x1], 0  ;;  %s2416_s18 = smov 0   ;;  %s2418_s19 = smov 0  }
   0x5   :  { %s2420_s20 = smov 0   ;;  %s2422_s21 = smov 0  }
   0x6 LB: > { %s2437_s22 = sadd.s32 4294967295, %s2373_s21   ;;  %s1698_s23 = sadd.s32 4294967294, %s2373_s21   ;;  %s2373_s21 = sphi %s2422_s21, %s3322_s21   ;;  %s2369_s20 = sphi %s2420_s20, %s3321_s20   ;;  %s2365_s19 = sphi %s2418_s19, %s3320_s19   ;;  %s2361_s18 = sphi %s2416_s18, %s3319_s18  }
   0x7   : > { %p42_p0 = scmp.ne.s32.totalorder %s2365_s19, %s2361_s18  ;;  %p3232_p1 = scmp.eq.s32.totalorder %s2437_s22, 0 }
   0x8   : > { %p156_p3 = scmp.eq.s32.totalorder %s1698_s23, 1  ;;  %p1699_p5 = scmp.ge.s32.totalorder %s2373_s21, 1 }
   0x9   : > { %p2446_p4 = por %p3232_p1, %p42_p0  ;;  %p163_p7 = scmp.lt.s32.totalorder %s2373_s21, 3 }
   0xa   : > { %p2451_p6 = por %p156_p3, %p42_p0  ;;  %s2375_s27 = smov [#allocation5]  }
   0xb   : > { %s3240_s24 = scalar_select %p2446_p4, 1, 0 }
   0xc   : > { %s3241_s25 = scalar_select %p2451_p6, 1, 0 }
   0xd   : > { %p2456_p8 = pnand %p1699_p5, %p163_p7  ;;  %s175_s28 = sshll.u32 %s2375_s27, 4  ;;  %s176_s28 = int_to_ptr.vmem [resolvable:$true] %s175_s28 }
   0xe   : > { %s2376_s30 = smov [#allocation7]   ;;  %s2236_s7 = scalar_lea.vmem %s176_s28, 3072 }
   0xf   : > { %s3242_s26 = scalar_select %p2456_p8, 1, 0 }
  0x10   : > { %p2100_p9 = pneg %p2456_p8  ;;  %s191_s6 = sshll.u32 %s2376_s30, 4  ;;  %s192_s6 = int_to_ptr.vmem [resolvable:$true] %s191_s6 }
  0x11   : > { %p2237_p13 = scmp.ne.s32.totalorder %s176_s28, %s2236_s7  ;;  %p2244_p5 = scmp.lt.s32.totalorder %s176_s28, %s176_s28 }
  0x12   : > { %p2465_p11 = pnand %p2100_p9, %p3232_p1  ;;  %p2245_p7 = scmp.lt.s32.totalorder %s2236_s7, %s2236_s7 }
  0x14   : > { %p2227_p12 = pneg %p2465_p11  ;;  %p2246_p10 = por %p2245_p7, %p2244_p5 }
  0x16   : > { %p2239_p0 = pnand %p2237_p13, %p2227_p12 }
  0x18   : > { %p2240_p3 = pneg %p2239_p0 }
  0x1a   : > { %p2247_p9 = pnand %p2246_p10, %p2240_p3 }
  0x1c   : > { %2250 = shalt.err (!%p2247_p9)
}
  0x1d   : > { %s2377_s8 = smov 64   ;;  %s2378_s9 = smov 4  }
  0x1e   : > { %2103 = dma.hbm_to_vmem [thread:$0]  (!%p2465_p11), %s3227_s1, 3072, %s176_s28, [#allocation6], %s2377_s8, %s2377_s8, %s2378_s9  }
  0x1f   : > { %s2262_s12 = scalar_lea.vmem %s192_s6, 3072  ;;  %p2270_p2 = scmp.lt.s32.totalorder %s192_s6, %s192_s6 }
  0x20   : > { %p2263_p1 = scmp.ne.s32.totalorder %s192_s6, %s2262_s12  ;;  %p2271_p6 = scmp.lt.s32.totalorder %s2262_s12, %s2262_s12 }
  0x22   : > { %p2265_p13 = pnand %p2263_p1, %p2227_p12  ;;  %p2272_p5 = por %p2271_p6, %p2270_p2 }
  0x24   : > { %p2266_p0 = pneg %p2265_p13 }
  0x26   : > { %p2273_p10 = pnand %p2272_p5, %p2266_p0 }
  0x28   : > { %2276 = shalt.err (!%p2273_p10)
}
  0x29   : > { %2106 = dma.hbm_to_vmem [thread:$0]  (!%p2465_p11), %s3229_s3, 3072, %s192_s6, [#allocation6], %s2377_s8, %s2377_s8, %s2378_s9  }
  0x2a   : > { %s2488_s15 = sadd.s32 1, %s2373_s21   ;;  %s29_s16 = sadd.s32 1, %s2369_s20 }
  0x2b   : > { %s26_s17 = ssub.s32 %s2373_s21, %s2488_s15  ;;  %p36_p1 = scmp.ne.s32.totalorder %s2369_s20, %s2365_s19 }
  0x2c   : > { %p27_p2 = scmp.eq.s32.totalorder %s26_s17, 0  ;;  %p37_p6 = scmp.eq.s32.totalorder %s2373_s21, 0 }
  0x2d   : > { %p3244_p12 = scmp.eq.s32.totalorder %s2437_s22, 1  ;;  %p2117_p7 = scmp.lt.s32.totalorder %s2373_s21, 2 }
  0x2e   : > { %s2504_s27 = scalar_select %p27_p2, %s2369_s20, %s29_s16  }
  0x2f   : > { %p2498_p3 = por %p3244_p12, %p36_p1  ;;  %p38_p9 = por %p37_p6, %p36_p1 }
  0x30   : > { %s208_s28 = sand.u32 1, %s2369_s20   ;;  %s1862_s30 = sshll.u32 %s2373_s21, 11 }
  0x31   : > { %s3245_s23 = scalar_select %p2498_p3, 1, 0 }
  0x32   : > { %s1703_s29 = sshll.u32 %s208_s28, 7  ;;  %s2511_s8 = scalar_lea.hbm %s3226_s0, %s1862_s30 }
  0x33   : > { %s212_s9 = scalar_lea.vmem [#allocation2], %s1703_s29  ;;  %p2515_p11 = pnand %p2117_p7, %p38_p9 }
  0x34   : > { %s219_s10 = sshll.u32 %s212_s9, 4  ;;  %s2519_s12 = scalar_lea.sflag [#allocation3], %s208_s28  ;;  %s2513_s10 = int_to_ptr.vmem [resolvable:$true] %s219_s10 }
  0x35   : > { %s2277_s13 = scalar_lea.hbm %s2511_s8, 2048  ;;  %p2279_p0 = pneg %p2515_p11 }
  0x36   : > { %p2278_p13 = scmp.ne.s32.totalorder %s2511_s8, %s2277_s13  ;;  %s2282_s17 = scalar_lea.hbm %s3226_s0, 4096 }
  0x37   : > { %p2283_p1 = scmp.lt.s32.totalorder %s2511_s8, %s3226_s0  ;;  %p2284_p2 = scmp.lt.s32.totalorder %s2282_s17, %s2277_s13 }
  0x38   : > { %p2280_p5 = pnand %p2279_p0, %p2278_p13 }
  0x39   : > { %p2285_p6 = por %p2284_p2, %p2283_p1 }
  0x3a   : > { %p2281_p10 = pneg %p2280_p5 }
  0x3c   : > { %p2286_p12 = pnand %p2285_p6, %p2281_p10 }
  0x3e   : > { %2289 = shalt.err (!%p2286_p12)
}
  0x3f   : > { %s2290_s28 = scalar_lea.vmem %s2513_s10, 2048  ;;  %s2379_s6 = smov [#allocation2]  }
  0x40   : > { %p2291_p7 = scmp.ne.s32.totalorder %s2513_s10, %s2290_s28  ;;  %s2295_s7 = sshll.u32 %s2379_s6, 4  ;;  %s2296_s7 = int_to_ptr.vmem [resolvable:$false] %s2295_s7 }
  0x41   : > { %s2297_s9 = scalar_lea.vmem %s2296_s7, 4096  ;;  %p2298_p5 = scmp.lt.s32.totalorder %s2513_s10, %s2296_s7 }
  0x42   : > { %p2293_p9 = pnand %p2291_p7, %p2279_p0  ;;  %p2299_p3 = scmp.lt.s32.totalorder %s2297_s9, %s2290_s28 }
  0x44   : > { %p2294_p13 = pneg %p2293_p9  ;;  %p2300_p4 = por %p2299_p3, %p2298_p5 }
  0x46   : > { %p2301_p8 = pnand %p2300_p4, %p2294_p13 }
  0x48   : > { %2304 = shalt.err (!%p2301_p8)
}
  0x49   : > { %s2380_s13 = smov 128   ;;  %s2381_s14 = smov 8  }
  0x4a   : > { %2110 = dma.hbm_to_vmem [thread:$0]  (!%p2515_p11), %s2511_s8, 2048, %s2513_s10, %s2519_s12, %s2380_s13, %s2380_s13, %s2381_s14  }
  0x4b   : > { %p3247_p0 = scmp.ne.s32.totalorder %s3242_s26, 0 }
  0x4c   : > { %s2543_s16 = sand.u32 (!%p3247_p0), 1, %s2365_s19   ;;  %p3248_p4 = scmp.ne.s32.totalorder (!%p3247_p0), %s3240_s24, 0 }
  0x4d   : > { %231 = sbr.rel (%p3247_p0) target bundleno = 662 (0x296), region = 40  ;;  %s1707_s17 = sshll.u32 (!%p3247_p0), %s2543_s16, 7 }
  0x4e   : > { %s234_s29 = scalar_lea.sflag (!%p3247_p0), [#allocation3], %s2543_s16  ;;  %s2549_s30 = scalar_lea.vmem (!%p3247_p0), [#allocation2], %s1707_s17 }
  0x52   : > { %2348 = dma.done.wait (%p3248_p4), %s234_s29, 2048  }
  0x53   : > { %2350 = vsyncadd (%p3248_p4), %s234_s29, 4294965248  ;;  %p3249_p8 = scmp.eq.s32.totalorder %s2437_s22, 0 }
  0x55   : > { %2352 = dma.done.wait (%p3249_p8), [#allocation6], 6144   ;;  %p3250_p3 = pmov %p3249_p8 }
  0x56   : > { %v2162_v0 = vld [vmem:[#allocation5 + $0x78] sm:$0xff]   ;;  %v2164_v2 = vld [vmem:[#allocation5 + $0x70] sm:$0xff]   ;;  %v2167_v5 = vld [vmem:[#allocation5 + $0x68] sm:$0xff]   ;;  %v291_v10 = vlaneseq  ;;  %vm2382_vm5 = vmmov 1   ;;  %s3129_s11 = scalar_lea.vmem [#allocation8], %s1707_s17  ;;  %s1863_s12 = sshll.u32 %s2437_s22, 11 }
  0x57   : > { %2354 = vsyncadd (%p3250_p3), [#allocation6], 4294961152  ;;  %v2163_v1 = vld [vmem:[#allocation5 + $0x38] sm:$0xff]   ;;  %1864 = vmatprep.subr.bf16.mxu0 %v2162_v0  ;;  %v2166_v4 = vld [vmem:[#allocation5 + $0x30] sm:$0xff]   ;;  %s1606_s28 = sshll.u32 %s3129_s11, 4  ;;  %s3179_s9 = scalar_lea.hbm %s3231_s5, %s1863_s12  ;;  %s3181_s28 = int_to_ptr.vmem [resolvable:$true] %s1606_s28 }
  0x58   : > { %1865 = vmatpush3.bf16.msra.mxu0 %v2163_v1  ;;  %v2165_v3 = vld [vmem:[#allocation5 + $0xb8] sm:$0xff]   ;;  %v2168_v6 = vld [vmem:[#allocation5 + $0xb0] sm:$0xff]   ;;  %v2169_v7 = vld [vmem:[#allocation5 + $0x28] sm:$0xff]   ;;  %v2559_v14 = vshrl.u32 %v291_v10, 7  ;;  %s1593_s13 = scalar_lea.sflag [#allocation4], %s2543_s16  ;;  %s2305_s14 = scalar_lea.vmem %s3181_s28, 2048 }
  0x59   : > { %1866 = vmatprep.subr.bf16.mxu0 %v2164_v2  ;;  %2024 = vmatprep.subr.bf16.mxu1 %v2165_v3  ;;  %v2170_v8 = vld [vmem:[#allocation5 + $0x60] sm:$0xff]   ;;  %v2171_v9 = vld [vmem:[#allocation5 + $0xa8] sm:$0xff]   ;;  %v2173_v12 = vld [vmem:[#allocation5 + $0x58] sm:$0xff]   ;;  %p2306_p11 = scmp.ne.s32.totalorder %s3181_s28, %s2305_s14  ;;  %p3316_p10 = scmp.ne.s32.totalorder %s3245_s23, 0 }
  0x5a   : > { %2025 = vmatpush3.bf16.msra.mxu1 %v2165_v3  ;;  %v2172_v11 = vld [vmem:[#allocation5 + $0x20] sm:$0xff]   ;;  %v2175_v15 = vld [vmem:[#allocation5 + $0x18] sm:$0xff]   ;;  %v2176_v17 = vld [vmem:[#allocation5 + $0x50] sm:$0xff]   ;;  %v312_v18 = vand.u32 15, %v2559_v14  ;;  %vm516_vm0 = vcmp.lt.s32.totalorder %v2559_v14, 1  ;;  %v293_v20 = vadd.s32 8, %v2559_v14 }
  0x5b   : > { %2026 = vmatprep.subr.bf16.mxu1 %v2168_v6  ;;  %v2174_v13 = vld [vmem:[#allocation5 + $0xa0] sm:$0xff]   ;;  %v2177_v16 = vld [vmem:[#allocation5 + $0x98] sm:$0xff]   ;;  %v2178_v19 = vld [vmem:[#allocation5 + $0x10] sm:$0xff]   ;;  %v295_v22 = vadd.s32 24, %v2559_v14  ;;  %vm3236_vm1 = vcmp.lt.s32.totalorder %v2559_v14, 7  ;;  %v294_v25 = vadd.s32 16, %v2559_v14  ;;  %p2307_p1 = pnand %p2306_p11, %p3316_p10 }
  0x5c   : > { %1867 = vmatpush3.bf16.msra.mxu0 %v2166_v4  ;;  %v2180_v21 = vld [vmem:[#allocation5 + $0x90] sm:$0xff]   ;;  %v2179_v23 = vld [vmem:[#allocation5 + $0x48] sm:$0xff]   ;;  %v319_v27 = vand.u32 15, %v293_v20  ;;  %v2568_v28 = vld [vmem:[%s2549_s30] sm:$0xff]  ;;  %v297_v32 = vadd.s32 40, %v2559_v14  ;;  %v299_v33 = vadd.s32 56, %v2559_v14 }
  0x5d   : > { %1868 = vmatprep.subr.bf16.mxu0 %v2167_v5  ;;  %v2181_v24 = vld [vmem:[#allocation5 + $0x8] sm:$0xff]   ;;  %v2574_v30 = vld [vmem:[%s2549_s30 + $0x78] sm:$0xff]  ;;  %v333_v31 = vand.u32 15, %v295_v22  ;;  %v2182_v34 = vld [vmem:[#allocation5 + $0x40] sm:$0xff]   ;;  %v500_v35 = vrot.slane %v2568_v28, 7  ;;  %v533_v40 = vrot.slane %v2568_v28, 1  ;;  %p2308_p2 = pneg %p2307_p1 }
  0x5e   : > { %2027 = vmatpush3.bf16.msra.mxu1 %v2168_v6  ;;  %v2183_v26 = vld [vmem:[#allocation5 + $0x88] sm:$0xff]   ;;  %v515_v38 = vrot.slane %v2574_v30, 7  ;;  %v2584_v39 = vld [vmem:[%s2549_s30 + $0x10] sm:$0xff]  ;;  %v326_v42 = vand.u32 15, %v294_v25  ;;  %vm2593_vm2 = vcmp.lt.s32.totalorder %v319_v27, 15  ;;  %v2598_v46 = vld [vmem:[%s2549_s30 + $0x18] sm:$0xff] }
  0x5f   : > { %2028 = vmatprep.subr.bf16.mxu1 %v2171_v9  ;;  %v2571_v29 = vld [vmem:[%s2549_s30 + $0x8] sm:$0xff]  ;;  %v535_v44 = vrot.slane %v2584_v39, 1  ;;  %v2601_v47 = vld [vmem:[%s2549_s30 + $0x20] sm:$0xff]  ;;  %v2604_v48 = vadd.s32 32, %v2559_v14  ;;  %v536_v53 = vrot.slane %v2598_v46, 1  ;;  %vm2616_vm3 = vcmp.gt.s32.totalorder %v312_v18, 0  ;;  %vm2632_vm6 = vmpackc.low %vm2593_vm2, %vm2382_vm5 }
  0x60   : > { %1869 = vmatpush3.bf16.msra.mxu0 %v2169_v7  ;;  %v501_v36 = vrot.slane %v2571_v29, 7  ;;  %v631_v37 = vpack.c.bf16 %v2571_v29, %v2568_v28  ;;  %v534_v41 = vrot.slane %v2571_v29, 1  ;;  %v2184_v49 = vld [vmem:[#allocation5] sm:$0xff]   ;;  %v532_v50 = vsel %vm516_vm0, %v515_v38, %v500_v35  ;;  %v2627_v58 = vld [vmem:[%s2549_s30 + $0x30] sm:$0xff]  ;;  %v2641_v63 = vld [vmem:[%s2549_s30 + $0x28] sm:$0xff]  ;;  %s2383_s22 = smov [#allocation8]  }
  0x61   : > { %1870 = vmatprep.subr.bf16.mxu0 %v2170_v8  ;;  %v2185_v51 = vld [vmem:[#allocation5 + $0x80] sm:$0xff]   ;;  %v537_v54 = vrot.slane %v2601_v47, 1  ;;  %vm2622_vm4 = vcmp.lt.s32.totalorder %v333_v31, 15  ;;  %v347_v59 = vand.u32 15, %v297_v32  ;;  %vm2636_vm7 = vcmp.gt.s32.totalorder %v326_v42, 0  ;;  %vm2652_vm8 = vmpackc.low %vm2382_vm5, %vm2616_vm3  ;;  %v2685_v20 = vld [vmem:[%s2549_s30 + $0x50] sm:$0xff] }
  0x62   : > { %2029 = vmatpush3.bf16.msra.mxu1 %v2171_v9  ;;  %885 = vmatprep.mubr.bf16.mxu0 %v631_v37  ;;  %v531_v43 = vsel %vm516_vm0, %v500_v35, %v501_v36  ;;  %v564_v52 = vsel %vm3236_vm1, %v533_v40, %v534_v41  ;;  %v563_v56 = vsel %vm3236_vm1, %v534_v41, %v535_v44  ;;  %v361_v0 = vand.u32 15, %v299_v33  ;;  %v2186_v22 = vld [vmem:[#allocation7 + $0xb8] sm:$0xff]   ;;  %vm2692_vm11 = vmpackc.low %vm2622_vm4, %vm2382_vm5  ;;  %v2729_v41 = vld [vmem:[%s2549_s30 + $0x60] sm:$0xff]  ;;  %s2309_s17 = sshll.u32 %s2383_s22, 4  ;;  %s2310_s17 = int_to_ptr.vmem [resolvable:$false] %s2309_s17 }
  0x63   : > { %2030 = vmatprep.subr.bf16.mxu1 %v2174_v13  ;;  %v1761_v61 = vpack.c.bf16 %v563_v56, %v564_v52  ;;  %v301_v1 = vadd.s32 72, %v2559_v14  ;;  %v1737_v2 = vpack.c.bf16 %v531_v43, %v532_v50  ;;  %v561_v3 = vsel %vm3236_vm1, %v536_v53, %v537_v54  ;;  %vm2716_vm13 = vmpackc.low %vm2382_vm5, %vm2636_vm7  ;;  %v2749_v52 = vld [vmem:[%s2549_s30 + $0x70] sm:$0xff]  ;;  %v2754_v56 = vld [vmem:[%s2549_s30 + $0x68] sm:$0xff]  ;;  %s2311_s29 = scalar_lea.vmem %s2310_s17, 4096  ;;  %p2312_p6 = scmp.lt.s32.totalorder %s3181_s28, %s2310_s17 }
  0x64   : > { %1871 = vmatpush3.bf16.msra.mxu0 %v2172_v11  ;;  %v562_v4 = vsel %vm3236_vm1, %v535_v44, %v536_v53  ;;  %v538_v5 = vrot.slane %v2641_v63, 1  ;;  %v634_v7 = vpack.c.bf16 %v2598_v46, %v2584_v39  ;;  %v502_v8 = vrot.slane %v2584_v39, 7  ;;  %v2662_v11 = vld [vmem:[%s2549_s30 + $0x38] sm:$0xff]  ;;  %p2313_p12 = scmp.lt.s32.totalorder %s2311_s29, %s2305_s14 }
  0x65   : > { %1872 = vmatprep.subr.bf16.mxu0 %v2173_v12  ;;  %v503_v9 = vrot.slane %v2598_v46, 7  ;;  %v539_v10 = vrot.slane %v2627_v58, 1  ;;  %v2665_v12 = vld [vmem:[%s2549_s30 + $0x40] sm:$0xff]  ;;  %2040 = vmatprep.mubr.msk.bf16.mxu1 %vm2632_vm6, %v1761_v61  ;;  %vm2671_vm9 = vcmp.lt.s32.totalorder %v347_v59, 15  ;;  %vm2680_vm10 = vcmp.lt.s32.totalorder %v361_v0, 15  ;;  %v2726_v39 = vld [vmem:[%s2549_s30 + $0x58] sm:$0xff] }
  0x66   : > { %2031 = vmatpush3.bf16.msra.mxu1 %v2174_v13  ;;  %v560_v13 = vsel %vm3236_vm1, %v537_v54, %v538_v5  ;;  %v540_v25 = vrot.slane %v2662_v11, 1  ;;  %v530_v31 = vsel %vm516_vm0, %v501_v36, %v502_v8  ;;  %vm2707_vm12 = vmpackc.low %vm2671_vm9, %vm2382_vm5  ;;  %v505_v35 = vrot.slane %v2641_v63, 7  ;;  %p2314_p7 = por %p2313_p12, %p2312_p6 }
  0x67   : > { %2032 = vmatprep.subr.bf16.mxu1 %v2177_v16  ;;  %v559_v18 = vsel %vm3236_vm1, %v538_v5, %v539_v10  ;;  %v529_v27 = vsel %vm516_vm0, %v502_v8, %v503_v9  ;;  %v543_v36 = vrot.slane %v2685_v20, 1  ;;  %v504_v37 = vrot.slane %v2601_v47, 7  ;;  %vm2761_vm15 = vmpackc.low %vm2680_vm10, %vm2382_vm5 }
  0x68   : > { %1873 = vmatpush3.bf16.msra.mxu0 %v2175_v15  ;;  %v1740_v42 = vpack.c.bf16 %v529_v27, %v530_v31  ;;  %v558_v44 = vsel %vm3236_vm1, %v539_v10, %v540_v25  ;;  %v637_v45 = vpack.c.bf16 %v2641_v63, %v2601_v47  ;;  %v340_v50 = vand.u32 15, %v2604_v48  ;;  %p2315_p9 = pnand %p2314_p7, %p2308_p2 }
  0x69   : > { %1874 = vmatprep.subr.bf16.mxu0 %v2176_v17  ;;  %v1764_v17 = vpack.c.bf16 %v561_v3, %v562_v4  ;;  %v305_v53 = vadd.s32 104, %v2559_v14  ;;  %v298_v55 = vadd.s32 48, %v2559_v14  ;;  %v544_v59 = vrot.slane %v2726_v39, 1 }
  0x6a   : > { %2033 = vmatpush3.bf16.msra.mxu1 %v2177_v16  ;;  %v2676_v16 = vld [vmem:[%s2549_s30 + $0x48] sm:$0xff]  ;;  %v545_v61 = vrot.slane %v2729_v41, 1  ;;  %v527_v62 = vsel %vm516_vm0, %v504_v37, %v505_v35  ;;  %v528_v63 = vsel %vm516_vm0, %v503_v9, %v504_v37  ;;  %vm570_vm3 = vcmp.gt.s32.totalorder %v340_v50, 0 }
  0x6b   : > { %2034 = vmatprep.subr.bf16.mxu1 %v2180_v21  ;;  %v542_v33 = vrot.slane %v2676_v16, 1  ;;  %v403_v3 = vand.u32 15, %v305_v53  ;;  %v640_v4 = vpack.c.bf16 %v2662_v11, %v2627_v58  ;;  %v354_v5 = vand.u32 15, %v298_v55  ;;  %vm2796_vm7 = vmpackc.low %vm2382_vm5, %vm570_vm3 }
  0x6c   : > { %1875 = vmatpush3.bf16.msra.mxu0 %v2178_v19  ;;  %v1743_v8 = vpack.c.bf16 %v527_v62, %v528_v63  ;;  %v506_v9 = vrot.slane %v2627_v58, 7  ;;  %v553_v10 = vsel %vm3236_vm1, %v544_v59, %v545_v61  ;;  %v307_v19 = vadd.s32 120, %v2559_v14 }
  0x6d   : > { %1876 = vmatprep.subr.bf16.mxu0 %v2179_v23  ;;  %v555_v46 = vsel %vm3236_vm1, %v542_v33, %v543_v36  ;;  %vm611_vm9 = vcmp.lt.s32.totalorder %v403_v3, 15  ;;  %v3287_v37 = vmov 0  ;;  %v3291_v50 = vmov 0 }
  0x6e   : > { %2035 = vmatpush3.bf16.msra.mxu1 %v2180_v21  ;;  %v375_v21 = vand.u32 15, %v301_v1  ;;  %v546_v1 = vrot.slane %v2754_v56, 1  ;;  %v526_v27 = vsel %vm516_vm0, %v505_v35, %v506_v9  ;;  %vm2822_vm3 = vmpackc.low %vm611_vm9, %vm2382_vm5  ;;  %v510_v53 = vrot.slane %v2685_v20, 7 }
  0x6f   : > { %2036 = vmatprep.subr.bf16.mxu1 %v2183_v26  ;;  %v649_v62 = vpack.c.bf16 %v2754_v56, %v2729_v41  ;;  %v512_v63 = vrot.slane %v2729_v41, 7  ;;  %v652_v41 = vpack.c.bf16 %v2574_v30, %v2749_v52 }
  0x70   : > { %1877 = vmatpush3.bf16.msra.mxu0 %v2181_v24  ;;  %v1767_v24 = vpack.c.bf16 %v559_v18, %v560_v13  ;;  %vm2744_vm14 = vcmp.lt.s32.totalorder %v375_v21, 15  ;;  %v554_v13 = vsel %vm3236_vm1, %v543_v36, %v544_v59  ;;  %v552_v58 = vsel %vm3236_vm1, %v545_v61, %v546_v1 }
  0x71   : > { %1878 = vmatprep.subr.bf16.mxu0 %v2182_v34  ;;  %v303_v34 = vadd.s32 88, %v2559_v14  ;;  %vm2774_vm2 = vmpackc.low %vm2744_vm14, %vm2382_vm5  ;;  %v1776_v21 = vpack.c.bf16 %v553_v10, %v554_v13  ;;  %vm572_vm14 = vcmp.gt.s32.totalorder %v354_v5, 0  ;;  %v304_v59 = vadd.s32 96, %v2559_v14 }
  0x72   : > { %2037 = vmatpush3.bf16.msra.mxu1 %v2183_v26  ;;  %v541_v26 = vrot.slane %v2665_v12, 1 }
  0x73   : > { %2038 = vmatprep.subr.bf16.mxu1 %v2185_v51  ;;  %v389_v47 = vand.u32 15, %v303_v34 }
  0x74   : > { %1879 = vmatpush3.bf16.msra.mxu0 %v2184_v49  ;;  %v557_v43 = vsel %vm3236_vm1, %v540_v25, %v541_v26  ;;  %v556_v49 = vsel %vm3236_vm1, %v541_v26, %v542_v33  ;;  %v548_v25 = vrot.slane %v2574_v30, 1  ;;  %v417_v33 = vand.u32 15, %v307_v19  ;;  %v2188_v30 = vld [vmem:[#allocation7 + $0xa8] sm:$0xff]   ;;  %v2191_v19 = vld [vmem:[#allocation7 + $0x90] sm:$0xff]  }
  0x75   : > { %2056 = vmatprep.subr.bf16.mxu0 %v2186_v22  ;;  %v1770_v54 = vpack.c.bf16 %v557_v43, %v558_v44  ;;  %v1773_v57 = vpack.c.bf16 %v555_v46, %v556_v49  ;;  %vm2784_vm4 = vcmp.lt.s32.totalorder %v389_v47, 15  ;;  %v643_v43 = vpack.c.bf16 %v2676_v16, %v2665_v12 }
  0x76   : > { %2039 = vmatpush3.bf16.msra.mxu1 %v2185_v51  ;;  %vm2812_vm10 = vmpackc.low %vm2784_vm4, %vm2382_vm5  ;;  %v565_v35 = vsel %vm3236_vm1, %v548_v25, %v533_v40  ;;  %v508_v44 = vrot.slane %v2665_v12, 7  ;;  %vm613_vm9 = vcmp.lt.s32.totalorder %v417_v33, 15  ;;  %v302_v12 = vadd.s32 80, %v2559_v14  ;;  %v2198_v33 = vld [vmem:[#allocation7 + $0x68] sm:$0xff]  }
  0x77   : > { %1738 = vmatmul.mubr.msk.bf16.vlgmr.msra.gmra.mxu0 %vm2652_vm8, %v1737_v2  ;;  %v547_v2 = vrot.slane %v2749_v52, 1  ;;  %vm2837_vm4 = vmpackc.low %vm2382_vm5, %vm572_vm14  ;;  %v646_v51 = vpack.c.bf16 %v2726_v39, %v2685_v20  ;;  %v3293_v20 = vmov 0 }
  0x78   : > { %893 = vmatprep.mubr.bf16.mxu0 %v634_v7  ;;  %2057 = vmatpush3.bf16.msra.mxu0 %v2186_v22  ;;  %v300_v22 = vadd.s32 64, %v2559_v14  ;;  %v3288_v37 = vsel %vm2837_vm4, 4294967295, %v3287_v37  ;;  %v382_v55 = vand.u32 15, %v302_v12  ;;  %v2209_v12 = vld [vmem:[#allocation7] sm:$0xff]  }
  0x79   : > { %2041 = vmatmul.mubr.msk.bf16.vlgmr.msra.gmra.mxu1 %vm2692_vm11, %v1764_v17  ;;  %v507_v17 = vrot.slane %v2662_v11, 7  ;;  %v551_v18 = vsel %vm3236_vm1, %v546_v1, %v547_v2  ;;  %v550_v36 = vsel %vm3236_vm1, %v547_v2, %v548_v25  ;;  %vm2848_vm1 = vmpackc.low %vm613_vm9, %vm2382_vm5  ;;  %v396_v1 = vand.u32 15, %v304_v59  ;;  %v2195_v25 = vld [vmem:[#allocation7 + $0x38] sm:$0xff]  }
  0x7a   : > { %2044 = vmatprep.mubr.msk.bf16.mxu1 %vm2707_vm12, %v1767_v24  ;;  %v1779_v24 = vpack.c.bf16 %v551_v18, %v552_v58  ;;  %v1782_v46 = vpack.c.bf16 %v565_v35, %v550_v36  ;;  %vm576_vm9 = vcmp.gt.s32.totalorder %v382_v55, 0  ;;  %v2190_v58 = vld [vmem:[#allocation7 + $0x98] sm:$0xff]   ;;  %v2200_v36 = vld [vmem:[#allocation7 + $0x60] sm:$0xff]  }
  0x7b   : > { %v525_v26 = vsel %vm516_vm0, %v506_v9, %v507_v17  ;;  %v2201_v35 = vld [vmem:[#allocation7 + $0x20] sm:$0xff]  }
  0x7c   : > { %v1746_v34 = vpack.c.bf16 %v525_v26, %v526_v27  ;;  %v2196_v26 = vld [vmem:[#allocation7 + $0x70] sm:$0xff]  }
  0x7d   : > { %v2197_v27 = vld [vmem:[#allocation7 + $0x30] sm:$0xff]  }
  0x7f   : > { %1741 = vmatmul.mubr.msk.bf16.gmra.mxu0 %vm2716_vm13, %v1740_v42  ;;  %v509_v42 = vrot.slane %v2676_v16, 7  ;;  %v524_v16 = vsel %vm516_vm0, %v507_v17, %v508_v44 }
  0x80   : > { %901 = vmatprep.mubr.bf16.mxu0 %v637_v45  ;;  %v368_v45 = vand.u32 15, %v300_v22  ;;  %v2193_v22 = vld [vmem:[#allocation7 + $0x80] sm:$0xff]  }
  0x81   : > { %2045 = vmatmul.mubr.msk.bf16.gmra.mxu1 %vm2761_vm15, %v1770_v54  ;;  %v523_v40 = vsel %vm516_vm0, %v508_v44, %v509_v42  ;;  %v511_v54 = vrot.slane %v2726_v39, 7  ;;  %v513_v39 = vrot.slane %v2754_v56, 7  ;;  %v2204_v44 = vld [vmem:[#allocation7 + $0x50] sm:$0xff]  }
  0x82   : > { %2048 = vmatprep.mubr.msk.bf16.mxu1 %vm2774_vm2, %v1773_v57  ;;  %vm574_vm14 = vcmp.gt.s32.totalorder %v368_v45, 0  ;;  %v1749_v49 = vpack.c.bf16 %v523_v40, %v524_v16  ;;  %v522_v57 = vsel %vm516_vm0, %v509_v42, %v510_v53  ;;  %v2202_v42 = vld [vmem:[#allocation7 + $0x58] sm:$0xff]   ;;  %v2205_v45 = vld [vmem:[#allocation7 + $0x10] sm:$0xff]   ;;  %v2207_v40 = vld [vmem:[#allocation7 + $0x8] sm:$0xff]  }
  0x83   : > { %v521_v47 = vsel %vm516_vm0, %v510_v53, %v511_v54  ;;  %v519_v2 = vsel %vm516_vm0, %v512_v63, %v513_v39  ;;  %v520_v3 = vsel %vm516_vm0, %v511_v54, %v512_v63  ;;  %v2208_v16 = vld [vmem:[#allocation7 + $0x40] sm:$0xff]  }
  0x84   : > { %v1752_v61 = vpack.c.bf16 %v521_v47, %v522_v57  ;;  %v1755_v5 = vpack.c.bf16 %v519_v2, %v520_v3  ;;  %v2917_v47 = vld [vmem:[%s3228_s2] ss:$0 sm:$0xff] }
  0x87   : > { %1744 = vmatmul.mubr.msk.bf16.gmra.mxu0 %vm2796_vm7, %v1743_v8  ;;  %v514_v8 = vrot.slane %v2749_v52, 7  ;;  %v2187_v52 = vld [vmem:[#allocation7 + $0xb0] sm:$0xff]  }
  0x88   : > { %909 = vmatprep.mubr.bf16.mxu0 %v640_v4  ;;  %v306_v4 = vadd.s32 112, %v2559_v14  ;;  %2058 = vmatprep.subr.bf16.mxu0 %v2187_v52 }
  0x89   : > { %2049 = vmatmul.mubr.msk.bf16.gmra.mxu1 %vm2812_vm10, %v1776_v21  ;;  %v517_v10 = vsel %vm516_vm0, %v514_v8, %v515_v38  ;;  %v518_v13 = vsel %vm516_vm0, %v513_v39, %v514_v8  ;;  %2059 = vmatpush3.bf16.msra.mxu0 %v2187_v52  ;;  %v2189_v38 = vld [vmem:[#allocation7 + $0xa0] sm:$0xff]   ;;  %v2192_v21 = vld [vmem:[#allocation7 + $0x88] sm:$0xff]  }
  0x8a   : > { %2052 = vmatprep.mubr.msk.bf16.mxu1 %vm2822_vm3, %v1779_v24  ;;  %v410_v9 = vand.u32 15, %v306_v4  ;;  %v1758_v17 = vpack.c.bf16 %v517_v10, %v518_v13  ;;  %2060 = vmatprep.subr.bf16.mxu0 %v2188_v30  ;;  %v2194_v24 = vld [vmem:[#allocation7 + $0x78] sm:$0xff]  }
  0x8b   : > { %1944 = vmatprep.subr.bf16.mxu1 %v2194_v24 }
  0x8c   : > { %1945 = vmatpush3.bf16.msra.mxu1 %v2195_v25 }
  0x8d   : > { %2061 = vmatpush3.bf16.msra.mxu0 %v2188_v30  ;;  %1946 = vmatprep.subr.bf16.mxu1 %v2196_v26 }
  0x8e   : > { %2062 = vmatprep.subr.bf16.mxu0 %v2189_v38 }
  0x8f   : > { %1747 = vmatmul.mubr.msk.bf16.gmra.mxu0 %vm2837_vm4, %v1746_v34  ;;  %vm2860_vm4 = vmpackc.low %vm2382_vm5, %vm574_vm14  ;;  %v2199_v34 = vld [vmem:[#allocation7 + $0x28] sm:$0xff]  }
  0x90   : > { %917 = vmatprep.mubr.bf16.mxu0 %v643_v43  ;;  %v3292_v50 = vsel %vm2860_vm4, 4294967295, %v3291_v50  ;;  %vm2876_vm14 = vmpackc.low %vm2382_vm5, %vm576_vm9  ;;  %vm578_vm9 = vcmp.gt.s32.totalorder %v396_v1, 0  ;;  %1947 = vmatpush3.bf16.msra.mxu1 %v2197_v27  ;;  %v2203_v43 = vld [vmem:[#allocation7 + $0x18] sm:$0xff]  }
  0x91   : > { %2053 = vmatmul.mubr.msk.bf16.gmra.mxu1 %vm2848_vm1, %v1782_v46  ;;  %v3294_v20 = vsel %vm2876_vm14, 4294967295, %v3293_v20  ;;  %2063 = vmatpush3.bf16.msra.mxu0 %v2189_v38  ;;  %v2206_v46 = vld [vmem:[#allocation7 + $0x48] sm:$0xff]  }
  0x92   : > { %2064 = vmatprep.subr.bf16.mxu0 %v2190_v58  ;;  %1948 = vmatprep.subr.bf16.mxu1 %v2198_v33 }
  0x94   : > { %1949 = vmatpush3.bf16.msra.mxu1 %v2199_v34 }
  0x95   : > { %2065 = vmatpush3.bf16.msra.mxu0 %v2190_v58  ;;  %1950 = vmatprep.subr.bf16.mxu1 %v2200_v36 }
  0x96   : > { %2066 = vmatprep.subr.bf16.mxu0 %v2191_v19 }
  0x97   : > { %1750 = vmatmul.mubr.msk.bf16.gmra.mxu0 %vm2860_vm4, %v1749_v49  ;;  %vm2892_vm4 = vmpackc.low %vm2382_vm5, %vm578_vm9  ;;  %vm580_vm9 = vcmp.gt.s32.totalorder %v410_v9, 0 }
  0x98   : > { %925 = vmatprep.mubr.bf16.mxu0 %v646_v51  ;;  %1951 = vmatpush3.bf16.msra.mxu1 %v2201_v35 }
  0x99   : > { %2067 = vmatpush3.bf16.msra.mxu0 %v2191_v19  ;;  %1952 = vmatprep.subr.bf16.mxu1 %v2202_v42 }
  0x9a   : > { %2068 = vmatprep.subr.bf16.mxu0 %v2192_v21 }
  0x9c   : > { %1953 = vmatpush3.bf16.msra.mxu1 %v2203_v43 }
  0x9d   : > { %2069 = vmatpush3.bf16.msra.mxu0 %v2192_v21  ;;  %1954 = vmatprep.subr.bf16.mxu1 %v2204_v44 }
  0x9e   : > { %2070 = vmatprep.subr.bf16.mxu0 %v2193_v22 }
  0x9f   : > { %1753 = vmatmul.mubr.msk.bf16.gmra.mxu0 %vm2876_vm14, %v1752_v61  ;;  %vm2908_vm14 = vmpackc.low %vm2382_vm5, %vm580_vm9  ;;  %vm3299_vm5 = vcmp.lt.s32.totalorder %v2559_v14, 7 }
  0xa0   : > { %933 = vmatprep.mubr.bf16.mxu0 %v649_v62  ;;  %1955 = vmatpush3.bf16.msra.mxu1 %v2205_v45  ;;  %vm3300_vm9 = vmmov %vm3299_vm5 }
  0xa1   : > { %2071 = vmatpush3.bf16.msra.mxu0 %v2193_v22  ;;  %1956 = vmatprep.subr.bf16.mxu1 %v2206_v46 }
  0xa4   : > { %1957 = vmatpush3.bf16.msra.mxu1 %v2207_v40 }
  0xa5   : > { %1958 = vmatprep.subr.bf16.mxu1 %v2208_v16 }
  0xa7   : > { %1756 = vmatmul.mubr.msk.bf16.gmra.mxu0 %vm2892_vm4, %v1755_v5 }
  0xa8   : > { %941 = vmatprep.mubr.bf16.mxu0 %v652_v41  ;;  %1959 = vmatpush3.bf16.msra.mxu1 %v2209_v12 }
  0xaf   : > { %1759 = vmatmul.mubr.msk.bf16.gmra.mxu0 %vm2908_vm14, %v1758_v17 }
 0x137   : > { %v1880_v49 = vpop.f32.mrf.mxu0 }
 0x139   : > { %v1881_v51 = vpop.f32.mrf.mxu0  ;;  %v2042_v54 = vpop.f32.mrf.mxu1 }
 0x13a   : > { %v1882_v53 = vadd.f32 %v1881_v51, %v1880_v49 }
 0x13b   : > { %v1883_v55 = vpop.f32.mrf.mxu0  ;;  %v984_v57 = vpop.f32.mrf.mxu1 }
 0x13c   : > { %v888_v39 = vadd.f32 %v1882_v53, %v2917_v47 }
 0x13d   : > { %v1884_v59 = vpop.f32.mrf.mxu0  ;;  %v2043_v62 = vpop.f32.mrf.mxu1 }
 0x13e   : > { %v1885_v61 = vadd.f32 %v1884_v59, %v1883_v55  ;;  %v2921_v4 = vadd.f32 %v984_v57, %v888_v39 }
 0x13f   : > { %v1886_v63 = vpop.f32.mrf.mxu0  ;;  %v987_v2 = vpop.f32.mrf.mxu1 }
 0x140   : > { %v891_v1 = vadd.f32 %v1885_v61, %v2917_v47  ;;  %v1079_v21 = vrot.slane %v2921_v4, 1 }
 0x141   : > { %v1887_v3 = vpop.f32.mrf.mxu0  ;;  %v2046_v9 = vpop.f32.mrf.mxu1 }
 0x142   : > { %v1888_v5 = vadd.f32 %v1887_v3, %v1886_v63  ;;  %v2923_v41 = vadd.f32 %v987_v2, %v891_v1 }
 0x143   : > { %v1889_v8 = vpop.f32.mrf.mxu0  ;;  %v1000_v19 = vpop.f32.mrf.mxu1 }
 0x144   : > { %v896_v10 = vadd.f32 %v1888_v5, %v2917_v47  ;;  %v1144_v13 = vpack.c.bf16 %v2923_v41, %v2921_v4  ;;  %v1080_v30 = vrot.slane %v2923_v41, 1 }
 0x145   : > { %v1890_v17 = vpop.f32.mrf.mxu0  ;;  %v2047_v42 = vpop.f32.mrf.mxu1 }
 0x146   : > { %v2928_v52 = vadd.f32 %v2042_v54, %v896_v10  ;;  %v1891_v38 = vadd.f32 %v1890_v17, %v1889_v8  ;;  %1398 = vmatprep.mubr.bf16.mxu1 %v1144_v13  ;;  %v1109_v34 = vsel %vm3300_vm9, %v1079_v21, %v1080_v30  ;;  %vm3301_vm9 = vmmov %vm3299_vm5 }
 0x147   : > { %v1892_v58 = vpop.f32.mrf.mxu0  ;;  %v1003_v12 = vpop.f32.mrf.mxu1 }
 0x148   : > { %v1081_v22 = vrot.slane %v2928_v52, 1  ;;  %v899_v24 = vadd.f32 %v1891_v38, %v2917_v47 }
 0x149   : > { %v1893_v25 = vpop.f32.mrf.mxu0  ;;  %v2050_v39 = vpop.f32.mrf.mxu1 }
 0x14a   : > { %v2934_v26 = vadd.f32 %v2043_v62, %v899_v24  ;;  %v1894_v27 = vadd.f32 %v1893_v25, %v1892_v58  ;;  %v1108_v33 = vsel %vm3299_vm5, %v1080_v30, %v1081_v22 }
 0x14b   : > { %v1895_v36 = vpop.f32.mrf.mxu0  ;;  %v1834_v35 = vpack.c.bf16 %v1108_v33, %v1109_v34  ;;  %v1016_v8 = vpop.f32.mrf.mxu1 }
 0x14c   : > { %v904_v43 = vadd.f32 %v1894_v27, %v2917_v47  ;;  %v1082_v45 = vrot.slane %v2934_v26, 1  ;;  %v1050_v31 = vrot.slane %v2934_v26, 7 }
 0x14d   : > { %v1896_v44 = vpop.f32.mrf.mxu0  ;;  %2072 = vmatprep.mubr.msk.bf16.mxu0 %vm2632_vm6, %v1834_v35  ;;  %vm3302_vm6 = vmmov %vm3299_vm5 }
 0x14e   : > { %v1897_v46 = vadd.f32 %v1896_v44, %v1895_v36  ;;  %v2946_v40 = vadd.f32 %v1000_v19, %v904_v43  ;;  %v1107_v55 = vsel %vm3301_vm9, %v1081_v22, %v1082_v45  ;;  %v2051_v22 = vpop.f32.mrf.mxu1  ;;  %vm3305_vm9 = vmmov %vm3299_vm5 }
 0x14f   : > { %v1898_v16 = vpop.f32.mrf.mxu0 }
 0x150   : > { %v1083_v49 = vrot.slane %v2946_v40, 1  ;;  %v907_v51 = vadd.f32 %v1897_v46, %v2917_v47  ;;  %v1019_v35 = vpop.f32.mrf.mxu1  ;;  %v1051_v6 = vrot.slane %v2946_v40, 7 }
 0x151   : > { %v1899_v53 = vpop.f32.mrf.mxu0 }
 0x152   : > { %v1106_v54 = vsel %vm3299_vm5, %v1082_v45, %v1083_v49  ;;  %v1900_v60 = vadd.f32 %v1899_v53, %v1898_v16  ;;  %v2954_v57 = vadd.f32 %v1003_v12, %v907_v51  ;;  %v2054_v51 = vpop.f32.mrf.mxu1 }
 0x153   : > { %v1837_v59 = vpack.c.bf16 %v1106_v54, %v1107_v55  ;;  %v1901_v61 = vpop.f32.mrf.mxu0 }
 0x154   : > { %v912_v62 = vadd.f32 %v1900_v60, %v2917_v47  ;;  %v1084_v2 = vrot.slane %v2954_v57, 1 }
 0x155   : > { %v1902_v63 = vpop.f32.mrf.mxu0  ;;  %2073 = vmatmul.mubr.msk.bf16.vlgmr.msra.gmra.mxu0 %vm2692_vm11, %v1837_v59  ;;  %vm3303_vm11 = vmmov %vm3299_vm5 }
 0x156   : > { %v2959_v1 = vadd.f32 %v2046_v9, %v912_v62  ;;  %v1903_v3 = vadd.f32 %v1902_v63, %v1901_v61  ;;  %v1105_v23 = vsel %vm3303_vm11, %v1083_v49, %v1084_v2  ;;  %v1032_v62 = vpop.f32.mrf.mxu1 }
 0x157   : > { %v1904_v5 = vpop.f32.mrf.mxu0 }
 0x158   : > { %v1085_v10 = vrot.slane %v2959_v1, 1  ;;  %v915_v13 = vadd.f32 %v1903_v3, %v2917_v47  ;;  %v1053_v29 = vrot.slane %v2959_v1, 7 }
 0x159   : > { %v1905_v17 = vpop.f32.mrf.mxu0 }
 0x15a   : > { %v2964_v30 = vadd.f32 %v2047_v42, %v915_v13  ;;  %v1906_v38 = vadd.f32 %v1905_v17, %v1904_v5  ;;  %v1104_v58 = vsel %vm3302_vm6, %v1084_v2, %v1085_v10  ;;  %v2055_v17 = vpop.f32.mrf.mxu1  ;;  %vm3307_vm6 = vmmov %vm3299_vm5 }
 0x15b   : > { %v1907_v9 = vpop.f32.mrf.mxu0  ;;  %v1840_v19 = vpack.c.bf16 %v1104_v58, %v1105_v23 }
 0x15c   : > { %v920_v24 = vadd.f32 %v1906_v38, %v2917_v47  ;;  %v1086_v27 = vrot.slane %v2964_v30, 1 }
 0x15d   : > { %v1908_v25 = vpop.f32.mrf.mxu0  ;;  %2076 = vmatprep.mubr.msk.bf16.mxu0 %vm2707_vm12, %v1840_v19  ;;  %vm3304_vm12 = vmmov %vm3299_vm5 }
 0x15e   : > { %v1909_v33 = vadd.f32 %v1908_v25, %v1907_v9  ;;  %v2974_v34 = vadd.f32 %v1016_v8, %v920_v24  ;;  %v1103_v32 = vsel %vm3304_vm12, %v1085_v10, %v1086_v27  ;;  %v1035_v24 = vpop.f32.mrf.mxu1 }
 0x15f   : > { %v1910_v36 = vpop.f32.mrf.mxu0 }
 0x160   : > { %v1087_v42 = vrot.slane %v2974_v34, 1  ;;  %v923_v43 = vadd.f32 %v1909_v33, %v2917_v47  ;;  %v1055_v15 = vrot.slane %v2974_v34, 7 }
 0x161   : > { %v1911_v44 = vpop.f32.mrf.mxu0 }
 0x162   : > { %v1912_v45 = vadd.f32 %v1911_v44, %v1910_v36  ;;  %v2978_v46 = vadd.f32 %v1019_v35, %v923_v43  ;;  %v1102_v16 = vsel %vm3299_vm5, %v1086_v27, %v1087_v42 }
 0x163   : > { %v1913_v12 = vpop.f32.mrf.mxu0  ;;  %v1843_v49 = vpack.c.bf16 %v1102_v16, %v1103_v32 }
 0x164   : > { %v928_v53 = vadd.f32 %v1912_v45, %v2917_v47  ;;  %v1088_v60 = vrot.slane %v2978_v46, 1 }
 0x165   : > { %v1914_v54 = vpop.f32.mrf.mxu0  ;;  %2077 = vmatmul.mubr.msk.bf16.gmra.mxu0 %vm2761_vm15, %v1843_v49  ;;  %vm3306_vm15 = vmmov %vm3299_vm5 }
 0x166   : > { %v2987_v55 = vadd.f32 %v2050_v39, %v928_v53  ;;  %v1915_v59 = vadd.f32 %v1914_v54, %v1913_v12  ;;  %v1101_v48 = vsel %vm3306_vm15, %v1087_v42, %v1088_v60 }
 0x167   : > { %v1916_v61 = vpop.f32.mrf.mxu0 }
 0x168   : > { %v1089_v63 = vrot.slane %v2987_v55, 1  ;;  %v931_v2 = vadd.f32 %v1915_v59, %v2917_v47 }
 0x169   : > { %v1917_v3 = vpop.f32.mrf.mxu0 }
 0x16a   : > { %v2992_v5 = vadd.f32 %v2051_v22, %v931_v2  ;;  %v1918_v8 = vadd.f32 %v1917_v3, %v1916_v61  ;;  %v1100_v10 = vsel %vm3305_vm9, %v1088_v60, %v1089_v63  ;;  %v1048_v60 = vrot.slane %v2923_v41, 7 }
 0x16b   : > { %v1919_v39 = vpop.f32.mrf.mxu0  ;;  %v1846_v13 = vpack.c.bf16 %v1100_v10, %v1101_v48 }
 0x16c   : > { %v936_v38 = vadd.f32 %v1918_v8, %v2917_v47  ;;  %v1090_v23 = vrot.slane %v2992_v5, 1 }
 0x16d   : > { %v1920_v58 = vpop.f32.mrf.mxu0  ;;  %2080 = vmatprep.mubr.msk.bf16.mxu0 %vm2774_vm2, %v1846_v13  ;;  %vm3308_vm2 = vmmov %vm3299_vm5  ;;  %v1049_v13 = vrot.slane %v2928_v52, 7 }
 0x16e   : > { %v1921_v9 = vadd.f32 %v1920_v58, %v1919_v39  ;;  %v3002_v19 = vadd.f32 %v1032_v62, %v936_v38  ;;  %v1099_v0 = vsel %vm3308_vm2, %v1089_v63, %v1090_v23  ;;  %vm3309_vm11 = vmmov %vm3308_vm2  ;;  %v1147_v39 = vpack.c.bf16 %v2934_v26, %v2928_v52 }
 0x16f   : > { %v1922_v22 = vpop.f32.mrf.mxu0  ;;  %vm3310_vm5 = vmmov %vm3308_vm2  ;;  %v1052_v38 = vrot.slane %v2954_v57, 7  ;;  %v1150_v26 = vpack.c.bf16 %v2954_v57, %v2946_v40  ;;  %v1074_v52 = vsel %vm516_vm0, %v1050_v31, %v1051_v6 }
 0x170   : > { %v1091_v25 = vrot.slane %v3002_v19, 1  ;;  %v939_v27 = vadd.f32 %v1921_v9, %v2917_v47  ;;  %vm3312_vm12 = vmmov %vm3308_vm2  ;;  %v1153_v9 = vpack.c.bf16 %v2964_v30, %v2959_v1 }
 0x171   : > { %v1923_v33 = vpop.f32.mrf.mxu0  ;;  %v1073_v28 = vsel %vm516_vm0, %v1051_v6, %v1052_v38  ;;  %v1072_v57 = vsel %vm516_vm0, %v1052_v38, %v1053_v29 }
 0x172   : > { %v1924_v36 = vadd.f32 %v1923_v33, %v1922_v22  ;;  %v3006_v35 = vadd.f32 %v1035_v24, %v939_v27  ;;  %v1098_v42 = vsel %vm3307_vm6, %v1090_v23, %v1091_v25  ;;  %v1816_v58 = vpack.c.bf16 %v1073_v28, %v1074_v52 }
 0x173   : > { %v1925_v43 = vpop.f32.mrf.mxu0  ;;  %v1849_v44 = vpack.c.bf16 %v1098_v42, %v1099_v0  ;;  %v1054_v23 = vrot.slane %v2964_v30, 7  ;;  %v1056_v24 = vrot.slane %v2978_v46, 7  ;;  %v1058_v33 = vrot.slane %v2992_v5, 7 }
 0x174   : > { %v944_v45 = vadd.f32 %v1924_v36, %v2917_v47  ;;  %v1092_v12 = vrot.slane %v3006_v35, 1  ;;  %v1159_v36 = vpack.c.bf16 %v2992_v5, %v2987_v55  ;;  %v1060_v0 = vrot.slane %v3006_v35, 7 }
 0x175   : > { %v1926_v16 = vpop.f32.mrf.mxu0  ;;  %2081 = vmatmul.mubr.msk.bf16.gmra.mxu0 %vm2812_vm10, %v1849_v44  ;;  %vm3311_vm10 = vmmov %vm3308_vm2  ;;  %v1071_v40 = vsel %vm516_vm0, %v1053_v29, %v1054_v23  ;;  %v1069_v1 = vsel %vm516_vm0, %v1055_v15, %v1056_v24  ;;  %v1070_v30 = vsel %vm516_vm0, %v1054_v23, %v1055_v15 }
 0x176   : > { %v3015_v32 = vadd.f32 %v2054_v51, %v944_v45  ;;  %v1927_v49 = vadd.f32 %v1926_v16, %v1925_v43  ;;  %v1097_v11 = vsel %vm3310_vm5, %v1091_v25, %v1092_v12  ;;  %v1047_v51 = vrot.slane %v2921_v4, 7 }
 0x177   : > { %v1075_v4 = vsel %vm516_vm0, %v1049_v13, %v1050_v31  ;;  %v1819_v22 = vpack.c.bf16 %v1071_v40, %v1072_v57  ;;  %v1156_v25 = vpack.c.bf16 %v2978_v46, %v2974_v34  ;;  %v1822_v27 = vpack.c.bf16 %v1069_v1, %v1070_v30  ;;  %v2213_v40 = vld [vmem:[%s2549_s30 + $0x18] sm:$0xff] }
 0x178   : > { %v1093_v53 = vrot.slane %v3015_v32, 1  ;;  %v947_v54 = vadd.f32 %v1927_v49, %v2917_v47  ;;  %v1077_v47 = vsel %vm516_vm0, %v1047_v51, %v1048_v60  ;;  %v1162_v43 = vpack.c.bf16 %v3006_v35, %v3002_v19 }
 0x179   : > { %v1061_v35 = vrot.slane %v3015_v32, 7 }
 0x17a   : > { %v3021_v59 = vadd.f32 %v2055_v17, %v947_v54  ;;  %v1096_v61 = vsel %vm3309_vm11, %v1092_v12, %v1093_v53 }
 0x17b   : > { %v1852_v62 = vpack.c.bf16 %v1096_v61, %v1097_v11 }
 0x17c   : > { %v1062_v63 = vrot.slane %v3021_v59, 7  ;;  %v1094_v2 = vrot.slane %v3021_v59, 1  ;;  %v1165_v45 = vpack.c.bf16 %v3021_v59, %v3015_v32  ;;  %v3122_v32 = vld [vmem:[%s3230_s4] ss:$0 sm:$0xff] }
 0x17d   : > { %2084 = vmatprep.mubr.msk.bf16.mxu0 %vm2822_vm3, %v1852_v62 }
 0x17e   : > { %v1078_v41 = vsel %vm516_vm0, %v1062_v63, %v1047_v51  ;;  %v1095_v3 = vsel %vm3311_vm10, %v1093_v53, %v1094_v2  ;;  %v1110_v8 = vsel %vm3312_vm12, %v1094_v2, %v1079_v21  ;;  %v1076_v21 = vsel %vm516_vm0, %v1048_v60, %v1049_v13  ;;  %v2210_v51 = vld [vmem:[%s2549_s30] sm:$0xff] }
 0x17f   : > { %v1810_v10 = vpack.c.bf16 %v1077_v47, %v1078_v41  ;;  %v1855_v48 = vpack.c.bf16 %v1110_v8, %v1095_v3  ;;  %v1813_v17 = vpack.c.bf16 %v1075_v4, %v1076_v21 }
 0x181   : > { %1811 = vmatmul.mubr.msk.bf16.vlgmr.msra.gmra.mxu1 %vm2652_vm8, %v1810_v10  ;;  %2085 = vmatmul.mubr.msk.bf16.gmra.mxu0 %vm2848_vm1, %v1855_v48  ;;  %vm3313_vm1 = vnez %v3288_v37  ;;  %vm3314_vm8 = vnez %v3292_v50  ;;  %v1057_v37 = vrot.slane %v2987_v55, 7  ;;  %v1059_v50 = vrot.slane %v3002_v19, 7  ;;  %v2211_v48 = vld [vmem:[%s2549_s30 + $0x8] sm:$0xff] }
 0x182   : > { %1406 = vmatprep.mubr.bf16.mxu1 %v1147_v39  ;;  %v1064_v19 = vsel %vm516_vm0, %v1060_v0, %v1061_v35 }
 0x183   : > { %v1067_v34 = vsel %vm516_vm0, %v1057_v37, %v1058_v33  ;;  %v1068_v46 = vsel %vm516_vm0, %v1056_v24, %v1057_v37  ;;  %v1065_v55 = vsel %vm516_vm0, %v1059_v50, %v1060_v0  ;;  %v1066_v5 = vsel %vm516_vm0, %v1058_v33, %v1059_v50 }
 0x184   : > { %v1825_v42 = vpack.c.bf16 %v1067_v34, %v1068_v46  ;;  %v1828_v44 = vpack.c.bf16 %v1065_v55, %v1066_v5 }
 0x189   : > { %1814 = vmatmul.mubr.msk.bf16.gmra.mxu1 %vm2716_vm13, %v1813_v17  ;;  %vm3315_vm13 = vnez %v3294_v20  ;;  %v1063_v20 = vsel %vm516_vm0, %v1061_v35, %v1062_v63 }
 0x18a   : > { %1414 = vmatprep.mubr.bf16.mxu1 %v1150_v26  ;;  %v1831_v16 = vpack.c.bf16 %v1063_v20, %v1064_v19  ;;  %v2212_v26 = vld [vmem:[%s2549_s30 + $0x10] sm:$0xff] }
 0x18b   : > { %v2216_v19 = vld [vmem:[%s2549_s30 + $0x30] sm:$0xff] }
 0x191   : > { %1817 = vmatmul.mubr.msk.bf16.gmra.mxu1 %vm2796_vm7, %v1816_v58 }
 0x192   : > { %1422 = vmatprep.mubr.bf16.mxu1 %v1153_v9 }
 0x199   : > { %1820 = vmatmul.mubr.msk.bf16.gmra.mxu1 %vm3313_vm1, %v1819_v22 }
 0x19a   : > { %1430 = vmatprep.mubr.bf16.mxu1 %v1156_v25 }
 0x1a1   : > { %1823 = vmatmul.mubr.msk.bf16.gmra.mxu1 %vm3314_vm8, %v1822_v27  ;;  %v2214_v27 = vld [vmem:[%s2549_s30 + $0x20] sm:$0xff] }
 0x1a2   : > { %1438 = vmatprep.mubr.bf16.mxu1 %v1159_v36 }
 0x1a9   : > { %1826 = vmatmul.mubr.msk.bf16.gmra.mxu1 %vm3315_vm13, %v1825_v42 }
 0x1aa   : > { %1446 = vmatprep.mubr.bf16.mxu1 %v1162_v43  ;;  %v2215_v43 = vld [vmem:[%s2549_s30 + $0x28] sm:$0xff] }
 0x1b1   : > { %1829 = vmatmul.mubr.msk.bf16.gmra.mxu1 %vm2892_vm4, %v1828_v44 }
 0x1b2   : > { %1454 = vmatprep.mubr.bf16.mxu1 %v1165_v45 }
 0x1b9   : > { %1832 = vmatmul.mubr.msk.bf16.gmra.mxu1 %vm2908_vm14, %v1831_v16 }
 0x215   : > { %v2074_v12 = vpop.f32.mrf.mxu0 }
 0x217   : > { %v1497_v7 = vpop.f32.mrf.mxu0 }
 0x219   : > { %v2075_v59 = vpop.f32.mrf.mxu0 }
 0x21b   : > { %v1500_v47 = vpop.f32.mrf.mxu0 }
 0x225   : > { %v2078_v13 = vpop.f32.mrf.mxu0 }
 0x227   : > { %v1513_v52 = vpop.f32.mrf.mxu0 }
 0x229   : > { %v2079_v24 = vpop.f32.mrf.mxu0 }
 0x22b   : > { %v1516_v37 = vpop.f32.mrf.mxu0 }
 0x235   : > { %v2082_v5 = vpop.f32.mrf.mxu0 }
 0x241   : > { %v1960_v49 = vpop.f32.mrf.mxu1 }
 0x243   : > { %v1961_v53 = vpop.f32.mrf.mxu1 }
 0x244   : > { %v1962_v54 = vadd.f32 %v1961_v53, %v1960_v49  ;;  %v1529_v49 = vpop.f32.mrf.mxu0 }
 0x245   : > { %v1963_v60 = vpop.f32.mrf.mxu1 }
 0x246   : > { %v1401_v14 = vadd.f32 %v1962_v54, %v3122_v32 }
 0x247   : > { %v1964_v61 = vpop.f32.mrf.mxu1 }
 0x248   : > { %v1498_v11 = vadd.f32 %v1497_v7, %v1401_v14  ;;  %v1965_v18 = vadd.f32 %v1964_v61, %v1963_v60  ;;  %v2217_v14 = vld [vmem:[%s2549_s30 + $0x38] sm:$0xff] }
 0x249   : > { %v1966_v62 = vpop.f32.mrf.mxu1 }
 0x24a   : > { %v1560_v63 = vadd.f32 %v2210_v51, %v1498_v11  ;;  %v1404_v2 = vadd.f32 %v1965_v18, %v3122_v32  ;;  %v2083_v11 = vpop.f32.mrf.mxu0 }
 0x24b   : > { %v1967_v41 = vpop.f32.mrf.mxu1 }
 0x24c   : > { %1576 = vst [vmem:[%s3129_s11] sm:$0xff] %v1560_v63  ;;  %v1501_v3 = vadd.f32 %v1500_v47, %v1404_v2  ;;  %v1968_v8 = vadd.f32 %v1967_v41, %v1966_v62  ;;  %v2218_v2 = vld [vmem:[%s2549_s30 + $0x40] sm:$0xff] }
 0x24d   : > { %v1969_v10 = vpop.f32.mrf.mxu1 }
 0x24e   : > { %v1561_v31 = vadd.f32 %v2211_v48, %v1501_v3  ;;  %v1409_v39 = vadd.f32 %v1968_v8, %v3122_v32  ;;  %v1532_v3 = vpop.f32.mrf.mxu0 }
 0x24f   : > { %v1970_v4 = vpop.f32.mrf.mxu1 }
 0x250   : > { %1577 = vst [vmem:[%s3129_s11 + $0x8] sm:$0xff] %v1561_v31  ;;  %v1506_v21 = vadd.f32 %v2074_v12, %v1409_v39  ;;  %v1971_v17 = vadd.f32 %v1970_v4, %v1969_v10  ;;  %v2219_v39 = vld [vmem:[%s2549_s30 + $0x48] sm:$0xff] }
 0x251   : > { %v1972_v38 = vpop.f32.mrf.mxu1 }
 0x252   : > { %v1562_v6 = vadd.f32 %v2212_v26, %v1506_v21  ;;  %v1412_v28 = vadd.f32 %v1971_v17, %v3122_v32  ;;  %v2086_v21 = vpop.f32.mrf.mxu0 }
 0x253   : > { %v1973_v58 = vpop.f32.mrf.mxu1 }
 0x254   : > { %1578 = vst [vmem:[%s3129_s11 + $0x10] sm:$0xff] %v1562_v6  ;;  %v1509_v23 = vadd.f32 %v2075_v59, %v1412_v28  ;;  %v1974_v9 = vadd.f32 %v1973_v58, %v1972_v38  ;;  %v2220_v28 = vld [vmem:[%s2549_s30 + $0x50] sm:$0xff] }
 0x255   : > { %v1975_v29 = vpop.f32.mrf.mxu1 }
 0x256   : > { %v1563_v57 = vadd.f32 %v2213_v40, %v1509_v23  ;;  %v1417_v22 = vadd.f32 %v1974_v9, %v3122_v32  ;;  %v1545_v23 = vpop.f32.mrf.mxu0 }
 0x257   : > { %v1976_v25 = vpop.f32.mrf.mxu1 }
 0x258   : > { %1579 = vst [vmem:[%s3129_s11 + $0x18] sm:$0xff] %v1563_v57  ;;  %v1514_v15 = vadd.f32 %v1513_v52, %v1417_v22  ;;  %v1977_v1 = vadd.f32 %v1976_v25, %v1975_v29  ;;  %v2221_v22 = vld [vmem:[%s2549_s30 + $0x58] sm:$0xff] }
 0x259   : > { %v1978_v30 = vpop.f32.mrf.mxu1 }
 0x25a   : > { %v1564_v33 = vadd.f32 %v2214_v27, %v1514_v15  ;;  %v1420_v36 = vadd.f32 %v1977_v1, %v3122_v32  ;;  %v2087_v15 = vpop.f32.mrf.mxu0 }
 0x25b   : > { %v1979_v34 = vpop.f32.mrf.mxu1 }
 0x25c   : > { %1580 = vst [vmem:[%s3129_s11 + $0x20] sm:$0xff] %v1564_v33  ;;  %v1517_v46 = vadd.f32 %v1516_v37, %v1420_v36  ;;  %v1980_v42 = vadd.f32 %v1979_v34, %v1978_v30  ;;  %v2222_v36 = vld [vmem:[%s2549_s30 + $0x60] sm:$0xff] }
 0x25d   : > { %v1981_v0 = vpop.f32.mrf.mxu1 }
 0x25e   : > { %v1565_v50 = vadd.f32 %v2215_v43, %v1517_v46  ;;  %v1425_v55 = vadd.f32 %v1980_v42, %v3122_v32  ;;  %v1548_v46 = vpop.f32.mrf.mxu0 }
 0x25f   : > { %v1982_v44 = vpop.f32.mrf.mxu1 }
 0x260   : > { %1581 = vst [vmem:[%s3129_s11 + $0x28] sm:$0xff] %v1565_v50  ;;  %v1522_v45 = vadd.f32 %v2078_v13, %v1425_v55  ;;  %v1983_v35 = vadd.f32 %v1982_v44, %v1981_v0 }
 0x261   : > { %v1984_v20 = vpop.f32.mrf.mxu1 }
 0x262   : > { %v1566_v16 = vadd.f32 %v2216_v19, %v1522_v45  ;;  %v1428_v12 = vadd.f32 %v1983_v35, %v3122_v32 }
 0x263   : > { %v1985_v7 = vpop.f32.mrf.mxu1 }
 0x264   : > { %1582 = vst [vmem:[%s3129_s11 + $0x30] sm:$0xff] %v1566_v16  ;;  %v1525_v53 = vadd.f32 %v2079_v24, %v1428_v12  ;;  %v1986_v54 = vadd.f32 %v1985_v7, %v1984_v20  ;;  %v2223_v20 = vld [vmem:[%s2549_s30 + $0x70] sm:$0xff] }
 0x265   : > { %v1987_v60 = vpop.f32.mrf.mxu1 }
 0x266   : > { %v1567_v59 = vadd.f32 %v2217_v14, %v1525_v53  ;;  %v1433_v61 = vadd.f32 %v1986_v54, %v3122_v32 }
 0x267   : > { %v1988_v18 = vpop.f32.mrf.mxu1 }
 0x268   : > { %1583 = vst [vmem:[%s3129_s11 + $0x38] sm:$0xff] %v1567_v59  ;;  %v1530_v62 = vadd.f32 %v1529_v49, %v1433_v61  ;;  %v1989_v51 = vadd.f32 %v1988_v18, %v1987_v60 }
 0x269   : > { %v1990_v63 = vpop.f32.mrf.mxu1 }
 0x26a   : > { %v1568_v47 = vadd.f32 %v2218_v2, %v1530_v62  ;;  %v1436_v41 = vadd.f32 %v1989_v51, %v3122_v32 }
 0x26b   : > { %v1991_v8 = vpop.f32.mrf.mxu1 }
 0x26c   : > { %1584 = vst [vmem:[%s3129_s11 + $0x40] sm:$0xff] %v1568_v47  ;;  %v1533_v10 = vadd.f32 %v1532_v3, %v1436_v41  ;;  %v1992_v48 = vadd.f32 %v1991_v8, %v1990_v63 }
 0x26d   : > { %v1993_v31 = vpop.f32.mrf.mxu1 }
 0x26e   : > { %v1569_v13 = vadd.f32 %v2219_v39, %v1533_v10  ;;  %v1441_v4 = vadd.f32 %v1992_v48, %v3122_v32 }
 0x26f   : > { %v1994_v17 = vpop.f32.mrf.mxu1 }
 0x270   : > { %1585 = vst [vmem:[%s3129_s11 + $0x48] sm:$0xff] %v1569_v13  ;;  %v1538_v38 = vadd.f32 %v2082_v5, %v1441_v4  ;;  %v1995_v26 = vadd.f32 %v1994_v17, %v1993_v31 }
 0x271   : > { %v1996_v6 = vpop.f32.mrf.mxu1 }
 0x272   : > { %v1570_v52 = vadd.f32 %v2220_v28, %v1538_v38  ;;  %v1444_v58 = vadd.f32 %v1995_v26, %v3122_v32 }
 0x273   : > { %v1997_v9 = vpop.f32.mrf.mxu1 }
 0x274   : > { %1586 = vst [vmem:[%s3129_s11 + $0x50] sm:$0xff] %v1570_v52  ;;  %v1541_v29 = vadd.f32 %v2083_v11, %v1444_v58  ;;  %v1998_v40 = vadd.f32 %v1997_v9, %v1996_v6 }
 0x275   : > { %v1999_v57 = vpop.f32.mrf.mxu1 }
 0x276   : > { %v1571_v24 = vadd.f32 %v2221_v22, %v1541_v29  ;;  %v1449_v25 = vadd.f32 %v1998_v40, %v3122_v32 }
 0x277   : > { %v2000_v1 = vpop.f32.mrf.mxu1 }
 0x278   : > { %1587 = vst [vmem:[%s3129_s11 + $0x58] sm:$0xff] %v1571_v24  ;;  %v1546_v30 = vadd.f32 %v1545_v23, %v1449_v25  ;;  %v2001_v27 = vadd.f32 %v2000_v1, %v1999_v57 }
 0x279   : > { %v2002_v33 = vpop.f32.mrf.mxu1 }
 0x27a   : > { %v1572_v37 = vadd.f32 %v2222_v36, %v1546_v30  ;;  %v1452_v34 = vadd.f32 %v2001_v27, %v3122_v32 }
 0x27b   : > { %v2003_v42 = vpop.f32.mrf.mxu1 }
 0x27c   : > { %1588 = vst [vmem:[%s3129_s11 + $0x60] sm:$0xff] %v1572_v37  ;;  %v1549_v0 = vadd.f32 %v1548_v46, %v1452_v34  ;;  %v2004_v43 = vadd.f32 %v2003_v42, %v2002_v33 }
 0x27d   : > { %v2005_v50 = vpop.f32.mrf.mxu1 }
 0x27e   : > { %v1573_v55 = vadd.f32 %v1549_v0, %v2754_v56  ;;  %v1457_v5 = vadd.f32 %v2004_v43, %v3122_v32  ;;  %v2224_v56 = vld [vmem:[%s2549_s30 + $0x78] sm:$0xff] }
 0x27f   : > { %v2006_v44 = vpop.f32.mrf.mxu1 }
 0x280   : > { %1589 = vst [vmem:[%s3129_s11 + $0x68] sm:$0xff] %v1573_v55  ;;  %v1554_v45 = vadd.f32 %v2086_v21, %v1457_v5  ;;  %v2007_v35 = vadd.f32 %v2006_v44, %v2005_v50 }
 0x282   : > { %v1574_v19 = vadd.f32 %v2223_v20, %v1554_v45  ;;  %v1460_v16 = vadd.f32 %v2007_v35, %v3122_v32 }
 0x284   : > { %1590 = vst [vmem:[%s3129_s11 + $0x70] sm:$0xff] %v1574_v19  ;;  %v1557_v12 = vadd.f32 %v2087_v15, %v1460_v16 }
 0x286   : > { %v1575_v49 = vadd.f32 %v2224_v56, %v1557_v12 }
 0x288   : > { %1591 = vst [vmem:[%s3129_s11 + $0x78] sm:$0xff] %v1575_v49 }
 0x289   : > { %2318 = shalt.err (!%p2315_p9)
}
 0x28a   : > { %s2319_s30 = scalar_lea.hbm %s3179_s9, 2048  ;;  %s2323_s8 = scalar_lea.hbm %s3231_s5, 4096 }
 0x28b   : > { %p2320_p13 = scmp.ne.s32.totalorder %s3179_s9, %s2319_s30  ;;  %p2324_p4 = scmp.lt.s32.totalorder %s3179_s9, %s3231_s5 }
 0x28c   : > { %p2325_p8 = scmp.lt.s32.totalorder %s2323_s8, %s2319_s30 }
 0x28d   : > { %p2321_p5 = pnand %p2320_p13, %p3316_p10 }
 0x28e   : > { %p2326_p3 = por %p2325_p8, %p2324_p4 }
 0x28f   : > { %p2322_p0 = pneg %p2321_p5 }
 0x291   : > { %p2327_p11 = pnand %p2326_p3, %p2322_p0 }
 0x293   : > { %2330 = shalt.err (!%p2327_p11)
}
 0x294   : > { %s2384_s12 = smov 128   ;;  %s2385_s6 = smov 8  }
 0x295   : > { %2098 = dma.vmem_to_hbm [thread:$0]  (%p3316_p10), %s3181_s28, 2048, %s3179_s9, %s1593_s13, %s2384_s12, %s2384_s12, %s2385_s6  }
 0x296 PF: > { %s1621_s7 = sand.u32 1, %s2361_s18   ;;  %p3317_p1 = scmp.ne.s32.totalorder %s3241_s25, 0 }
 0x297   : > { %p3318_p2 = scmp.ge.s32.totalorder %s2373_s21, 2  ;;  %s1622_s14 = scalar_lea.sflag [#allocation4], %s1621_s7 }
 0x299   : > { %p2112_p6 = pnand %p3318_p2, %p3317_p1 }
 0x29b   : > { %p2113_p12 = pneg %p2112_p6 }
 0x29d   : > { %2356 = dma.done.wait (%p2113_p12), %s1622_s14, 2048  }
 0x29e   : > { %2358 = vsyncadd (%p2113_p12), %s1622_s14, 4294965248  ;;  %p19_p7 = scmp.ge.s32.totalorder %s2488_s15, 4   ;;  %s3319_s18 = smov %s2365_s19 }
 0x29f   : > { %s3320_s19 = smov %s2369_s20  ;;  %s3321_s20 = smov %s2504_s27 }
 0x2a0   : > { %s3322_s21 = smov %s2488_s15  ;;  %21 = sbr.rel (!%p19_p7) target bundleno = 6 (0x6), region = 93 }
 0x2a5   :  { %1627 = vsyncpa [#allocation3], 1 }
 0x2a6   :  { %1629 = vsyncpa [#allocation3 + $0x1], 1 }
 0x2a7   :  { %1630 = vsyncpa [#allocation6], 1 }
 0x2a8   :  { %1631 = vsyncpa [#allocation4], 1 }
 0x2a9   :  { %1633 = vsyncpa [#allocation4 + $0x1], 1 }

</bundles_post_ra>
